<compile_context>
chip_gen: v6e
topology: v6e:2x2x1
jax: 0.10.0
libtpu: 0.0.40
codegen_flags: <defaults>
</compile_context>

<pallas_src>
import functools

import jax
import jax.numpy as jnp
from jax.experimental import pallas as pl
from jax.experimental.pallas import tpu as pltpu

LANE = 128  # TPU lane width: the hidden feature dim is padded to this


def _round_up(n, m):
    return ((n + m - 1) // m) * m


def net_kernel(x_ref, w1_ref, b1_ref, w2_ref, b2_ref, o_ref):
    # fc1 (+ bias) + ReLU. f32 matmul, f32 accumulate (PyTorch parity).
    h = jnp.dot(x_ref[...], w1_ref[...], preferred_element_type=jnp.float32)
    h = jnp.maximum(h + b1_ref[...], 0.0)                 # (TB, HP) + (1, HP)
    # fc2 (+ bias). Zero-padded hidden rows of w2 contribute exactly 0.
    logits = jnp.dot(h, w2_ref[...], preferred_element_type=jnp.float32)
    logits = logits + b2_ref[...]                         # (TB, OUT) + (1, OUT)
    # Numerically stable softmax over the feature axis (dim=1 in PyTorch).
    m = jnp.max(logits, axis=1, keepdims=True)
    e = jnp.exp(logits - m)
    denom = jnp.sum(e, axis=1, keepdims=True)
    o_ref[...] = (e / denom).astype(o_ref.dtype)          # exact division


def prepare_params(w1, b1, w2, b2):
    """One-time parameter prep (call once, reuse across forward calls).

    Pads the hidden dim up to a full 128-lane vreg with zeros, which is inert
    through ReLU and the second matmul.
    """
    hid = w1.shape[1]
    hid_p = _round_up(hid, LANE)
    w1_p = jnp.pad(w1.astype(jnp.float32), ((0, 0), (0, hid_p - hid)))
    b1_p = jnp.pad(b1.astype(jnp.float32), ((0, 0), (0, hid_p - hid)))
    w2_p = jnp.pad(w2.astype(jnp.float32), ((0, hid_p - hid), (0, 0)))
    b2_p = b2.astype(jnp.float32)
    return w1_p, b1_p, w2_p, b2_p


@functools.partial(jax.jit, static_argnames=("block_b",))
def net_forward(x, w1_p, b1_p, w2_p, b2_p, *, block_b=2048):
    """x: (B, in); w1_p: (in, hid_p); b1_p: (1, hid_p); w2_p: (hid_p, out); b2_p: (1, out)."""
    x = x.astype(jnp.float32)                 # mirrors x.float() in PyTorch
    B, in_size = x.shape
    hid_p = w1_p.shape[1]
    out_size = w2_p.shape[1]

    # Batch tile: as large as possible (fewest grid steps), sublane-aligned,
    # with minimal row padding. B=300, block_b>=300 -> tb=304, grid=1, 4 pad
    # rows. On v7x pass block_b ~= ceil(B/2) for an even 2-step grid.
    tb = _round_up(min(block_b, B), 8)
    b_p = _round_up(B, tb)
    x_p = x if b_p == B else jnp.pad(x, ((0, b_p - B), (0, 0)))
    n_steps = b_p // tb

    flops = 2 * b_p * (in_size * hid_p + hid_p * out_size)
    bytes_accessed = 4 * (b_p * in_size + w1_p.size + b1_p.size
                          + w2_p.size + b2_p.size + b_p * out_size)

    out = pl.pallas_call(
        net_kernel,
        out_shape=jax.ShapeDtypeStruct((b_p, out_size), jnp.float32),
        grid=(n_steps,),
        in_specs=[
            pl.BlockSpec((tb, in_size), lambda i: (i, 0)),     # x tile per step
            pl.BlockSpec((in_size, hid_p), lambda i: (0, 0)),  # VMEM-resident weights
            pl.BlockSpec((1, hid_p), lambda i: (0, 0)),
            pl.BlockSpec((hid_p, out_size), lambda i: (0, 0)),
            pl.BlockSpec((1, out_size), lambda i: (0, 0)),
        ],
        out_specs=pl.BlockSpec((tb, out_size), lambda i: (i, 0)),
        compiler_params=pltpu.CompilerParams(
            dimension_semantics=("parallel",)),
        cost_estimate=pl.CostEstimate(
            flops=flops,
            transcendentals=b_p * out_size,
            bytes_accessed=bytes_accessed),
    )(x_p, w1_p, b1_p, w2_p, b2_p)

    return out if b_p == B else out[:B]


def init_params(key, input_size, hidden_size, output_size):
    """Deterministic init mimicking nn.Linear's U(-1/sqrt(fan_in), 1/sqrt(fan_in))."""
    k1, k2, k3, k4 = jax.random.split(key, 4)
    lim1 = 1.0 / jnp.sqrt(jnp.float32(input_size))
    lim2 = 1.0 / jnp.sqrt(jnp.float32(hidden_size))
    # Stored pre-transposed: (in, out) so the kernel does x @ W.
    w1 = jax.random.uniform(k1, (input_size, hidden_size), jnp.float32, -lim1, lim1)
    b1 = jax.random.uniform(k2, (1, hidden_size), jnp.float32, -lim1, lim1)
    w2 = jax.random.uniform(k3, (hidden_size, output_size), jnp.float32, -lim2, lim2)
    b2 = jax.random.uniform(k4, (1, output_size), jnp.float32, -lim2, lim2)
    return w1, b1, w2, b2


if __name__ == "__main__":
    # Small shapes consistent with the module. B=300 exercises the minimal
    # row-padding path (pads to 304) with a single grid step.
    B, IN, HID, OUT = 300, 32, 64, 16
    key = jax.random.PRNGKey(0)
    kx, kp = jax.random.split(key)
    x = jax.random.normal(kx, (B, IN), jnp.float32)
    w1, b1, w2, b2 = init_params(kp, IN, HID, OUT)

    # One-time parameter prep (hoisted out of the forward path).
    params = prepare_params(w1, b1, w2, b2)
    params = jax.block_until_ready(params)

    # Default: whole batch in one grid step.
    out = net_forward(x, *params)
    out = jax.block_until_ready(out)
    assert out.shape == (B, OUT)

    # Pure-f32 reference identical to the PyTorch forward math.
    ref = jax.nn.softmax(jnp.maximum(x @ w1 + b1, 0.0) @ w2 + b2, axis=1)
    assert jnp.allclose(out, ref, atol=2e-3, rtol=1e-2), "mismatch vs f32 reference"
    # Exact division -> rows sum to 1 within f32 rounding.
    assert jnp.allclose(jnp.sum(out, axis=1), 1.0, atol=1e-5), "rows must sum to 1"

    # Multi-step grid path (e.g. an even 2-step grid for v7x dual-TC sharding).
    out2 = net_forward(x, *params, block_b=152)
    out2 = jax.block_until_ready(out2)
    assert out2.shape == (B, OUT)
    assert jnp.allclose(out2, ref, atol=2e-3, rtol=1e-2), "mismatch (2-step grid)"
    assert jnp.allclose(jnp.sum(out2, axis=1), 1.0, atol=1e-5)

    print("KERNEL_OK")
</pallas_src>

<mosaic_0001>
module attributes {stable_mosaic.version = 11 : i64} {
  func.func @net_kernel(%arg0: i32, %arg1: memref<304x32xf32, #tpu.memory_space<vmem>>, %arg2: memref<32x128xf32, #tpu.memory_space<vmem>>, %arg3: memref<1x128xf32, #tpu.memory_space<vmem>>, %arg4: memref<128x16xf32, #tpu.memory_space<vmem>>, %arg5: memref<1x16xf32, #tpu.memory_space<vmem>>, %arg6: memref<304x16xf32, #tpu.memory_space<vmem>>) attributes {dimension_semantics = [#tpu.dimension_semantics<parallel>], iteration_bounds = array<i64: 1>, scalar_prefetch = 0 : i64, scratch_operands = 0 : i64, tpu.core_type = #tpu.core_type<tc>, window_params = [{transform_indices = @transform_0, window_bounds = array<i64: 304, 32>}, {pipeline_mode = #tpu.pipeline_mode<synchronous>, transform_indices = @transform_1, window_bounds = array<i64: 32, 128>}, {pipeline_mode = #tpu.pipeline_mode<synchronous>, transform_indices = @transform_2, window_bounds = array<i64: 1, 128>}, {pipeline_mode = #tpu.pipeline_mode<synchronous>, transform_indices = @transform_3, window_bounds = array<i64: 128, 16>}, {pipeline_mode = #tpu.pipeline_mode<synchronous>, transform_indices = @transform_4, window_bounds = array<i64: 1, 16>}, {transform_indices = @transform_5, window_bounds = array<i64: 304, 16>}]} {
    %c0 = arith.constant 0 : index
    %c0_0 = arith.constant 0 : index
    %0 = vector.load %arg1[%c0, %c0_0] : memref<304x32xf32, #tpu.memory_space<vmem>>, vector<304x32xf32>
    %c0_1 = arith.constant 0 : index
    %c0_2 = arith.constant 0 : index
    %1 = vector.load %arg2[%c0_1, %c0_2] : memref<32x128xf32, #tpu.memory_space<vmem>>, vector<32x128xf32>
    %cst = arith.constant dense<0.000000e+00> : vector<304x128xf32>
    %2 = tpu.matmul %0, %1, %cst {dimension_numbers = #tpu.dot_dimension_numbers<[1], [0], [0], [1], [0, 0, 1, 1], [], []>} : vector<304x32xf32>, vector<32x128xf32>, vector<304x128xf32> -> vector<304x128xf32>
    %c0_3 = arith.constant 0 : index
    %c0_4 = arith.constant 0 : index
    %3 = vector.load %arg3[%c0_3, %c0_4] : memref<1x128xf32, #tpu.memory_space<vmem>>, vector<1x128xf32>
    %4 = vector.broadcast %3 : vector<1x128xf32> to vector<304x128xf32>
    %5 = arith.addf %2, %4 : vector<304x128xf32>
    %cst_5 = arith.constant 0.000000e+00 : f32
    %6 = vector.broadcast %cst_5 : f32 to vector<304x128xf32>
    %7 = arith.maximumf %5, %6 : vector<304x128xf32>
    %c0_6 = arith.constant 0 : index
    %c0_7 = arith.constant 0 : index
    %8 = vector.load %arg4[%c0_6, %c0_7] : memref<128x16xf32, #tpu.memory_space<vmem>>, vector<128x16xf32>
    %cst_8 = arith.constant dense<0.000000e+00> : vector<304x16xf32>
    %9 = tpu.matmul %7, %8, %cst_8 {dimension_numbers = #tpu.dot_dimension_numbers<[1], [0], [0], [1], [0, 0, 1, 1], [], []>} : vector<304x128xf32>, vector<128x16xf32>, vector<304x16xf32> -> vector<304x16xf32>
    %c0_9 = arith.constant 0 : index
    %c0_10 = arith.constant 0 : index
    %10 = vector.load %arg5[%c0_9, %c0_10] : memref<1x16xf32, #tpu.memory_space<vmem>>, vector<1x16xf32>
    %11 = vector.broadcast %10 : vector<1x16xf32> to vector<304x16xf32>
    %12 = arith.addf %9, %11 : vector<304x16xf32>
    %cst_11 = arith.constant dense<0xFF800000> : vector<304xf32>
    %13 = vector.multi_reduction <maximumf>, %12, %cst_11 [1] : vector<304x16xf32> to vector<304xf32>
    %14 = vector.shape_cast %13 : vector<304xf32> to vector<304x1xf32>
    %15 = vector.broadcast %14 : vector<304x1xf32> to vector<304x16xf32>
    %16 = arith.subf %12, %15 : vector<304x16xf32>
    %17 = math.exp %16 : vector<304x16xf32>
    %cst_12 = arith.constant dense<0.000000e+00> : vector<304xf32>
    %18 = vector.multi_reduction <add>, %17, %cst_12 [1] : vector<304x16xf32> to vector<304xf32>
    %19 = vector.shape_cast %18 : vector<304xf32> to vector<304x1xf32>
    %20 = vector.broadcast %19 : vector<304x1xf32> to vector<304x16xf32>
    %21 = arith.divf %17, %20 : vector<304x16xf32>
    %c0_13 = arith.constant 0 : index
    %c0_14 = arith.constant 0 : index
    %22 = vector.load %arg6[%c0_13, %c0_14] : memref<304x16xf32, #tpu.memory_space<vmem>>, vector<304x16xf32>
    tpu.vector_store %arg6[%c0_13, %c0_14], %21 {strides = array<i32>} : memref<304x16xf32, #tpu.memory_space<vmem>>, vector<304x16xf32>,
    return
  }
  func.func @transform_0(%arg0: i32) -> (i32, i32) {
    %c0_i32 = arith.constant 0 : i32
    %c0_i32_0 = arith.constant 0 : i32
    return %arg0, %c0_i32 : i32, i32
  }
  func.func @transform_1(%arg0: i32) -> (i32, i32) {
    %c0_i32 = arith.constant 0 : i32
    %c0_i32_0 = arith.constant 0 : i32
    %c0_i32_1 = arith.constant 0 : i32
    return %c0_i32, %c0_i32_0 : i32, i32
  }
  func.func @transform_2(%arg0: i32) -> (i32, i32) {
    %c0_i32 = arith.constant 0 : i32
    %c0_i32_0 = arith.constant 0 : i32
    %c0_i32_1 = arith.constant 0 : i32
    return %c0_i32, %c0_i32_0 : i32, i32
  }
  func.func @transform_3(%arg0: i32) -> (i32, i32) {
    %c0_i32 = arith.constant 0 : i32
    %c0_i32_0 = arith.constant 0 : i32
    %c0_i32_1 = arith.constant 0 : i32
    return %c0_i32, %c0_i32_0 : i32, i32
  }
  func.func @transform_4(%arg0: i32) -> (i32, i32) {
    %c0_i32 = arith.constant 0 : i32
    %c0_i32_0 = arith.constant 0 : i32
    %c0_i32_1 = arith.constant 0 : i32
    return %c0_i32, %c0_i32_0 : i32, i32
  }
  func.func @transform_5(%arg0: i32) -> (i32, i32) {
    %c0_i32 = arith.constant 0 : i32
    %c0_i32_0 = arith.constant 0 : i32
    return %arg0, %c0_i32 : i32, i32
  }
}

</mosaic_0001>

<bundles_post_ra>
// kernel: net_forward.1
= control target key start
LH: loop header
LB: loop body
LE: loop exit
PB: predicated region body
PF: predicated region fallthrough
CT: control target
= control target key end

     0   :  { %vm69_vm0 = vcmask 261120   ;;  %vm755_vm1 = vcmask 130048   ;;  %s2550_s1 = inlined_call_operand.vmem [shape: f32[32,128], index: 1, kind: input, shape index: {}]   ;;  %s2551_s0 = inlined_call_operand.vmem [shape: f32[304,32], index: 0, kind: input, shape index: {}]   ;;  %s2552_s3 = inlined_call_operand.vmem [shape: f32[128,16], index: 3, kind: input, shape index: {}]   ;;  %s2553_s2 = inlined_call_operand.vmem [shape: f32[1,128], index: 2, kind: input, shape index: {}]   ;;  %s2554_s4 = inlined_call_operand.vmem [shape: f32[1,16], index: 4, kind: input, shape index: {}]   ;;  %s2555_s5 = inlined_call_operand.vmem [shape: f32[304,16], index: 5, kind: output, shape index: {}]  }
   0x1   :  { %v61_v0 = vld [vmem:[%s2550_s1 + $0x18] sm:$0xff]  ;;  %v60_v1 = vld [vmem:[%s2550_s1 + $0x10] sm:$0xff]  ;;  %v20_v2 = vld [vmem:[%s2551_s0] sm:$0xff] }
   0x2   :  { %1352 = vmatprep.subr.mxu0 %v61_v0  ;;  %v59_v3 = vld [vmem:[%s2550_s1 + $0x8] sm:$0xff]  ;;  %1360 = vmatprep.mubr.msk.f32.mxu0 %vm69_vm0, %v20_v2  ;;  %v58_v4 = vld [vmem:[%s2550_s1] sm:$0xff]  ;;  %v22_v6 = vld [vmem:[%s2551_s0 + $0x10] sm:$0xff] }
   0x3   :  { %1353 = vmatpush3.msra.mxu0 %v61_v0  ;;  %v21_v5 = vld [vmem:[%s2551_s0 + $0x8] sm:$0xff]  ;;  %v23_v7 = vld [vmem:[%s2551_s0 + $0x18] sm:$0xff]  ;;  %v24_v8 = vld [vmem:[%s2551_s0 + $0x20] sm:$0xff] }
   0x4   :  { %1354 = vmatprep.subr.mxu0 %v60_v1  ;;  %v25_v9 = vld [vmem:[%s2551_s0 + $0x28] sm:$0xff]  ;;  %v492_v10 = vld [vmem:[%s2552_s3 + $0x78] sm:$0xff]  ;;  %v491_v11 = vld [vmem:[%s2552_s3 + $0x70] sm:$0xff] }
   0x5   :  { %1355 = vmatpush3.msra.mxu0 %v60_v1  ;;  %v26_v12 = vld [vmem:[%s2551_s0 + $0x30] sm:$0xff]  ;;  %1506 = vmatprep.subr.mxu1 %v492_v10  ;;  %v490_v13 = vld [vmem:[%s2552_s3 + $0x68] sm:$0xff]  ;;  %v27_v14 = vld [vmem:[%s2551_s0 + $0x38] sm:$0xff] }
   0x6   :  { %1356 = vmatprep.subr.mxu0 %v59_v3  ;;  %1522 = vmatpush3.msra.mxu1 %v492_v10  ;;  %v489_v15 = vld [vmem:[%s2552_s3 + $0x60] sm:$0xff]  ;;  %v488_v17 = vld [vmem:[%s2552_s3 + $0x58] sm:$0xff]  ;;  %v29_v18 = vld [vmem:[%s2551_s0 + $0x48] sm:$0xff] }
   0x7   :  { %1357 = vmatpush3.msra.mxu0 %v59_v3  ;;  %v28_v16 = vld [vmem:[%s2551_s0 + $0x40] sm:$0xff]  ;;  %1507 = vmatprep.subr.mxu1 %v491_v11  ;;  %v487_v19 = vld [vmem:[%s2552_s3 + $0x50] sm:$0xff]  ;;  %v486_v21 = vld [vmem:[%s2552_s3 + $0x48] sm:$0xff] }
   0x8   :  { %1358 = vmatprep.subr.mxu0 %v58_v4  ;;  %1523 = vmatpush3.msra.mxu1 %v491_v11  ;;  %v30_v20 = vld [vmem:[%s2551_s0 + $0x50] sm:$0xff]  ;;  %v31_v22 = vld [vmem:[%s2551_s0 + $0x58] sm:$0xff]  ;;  %v485_v23 = vld [vmem:[%s2552_s3 + $0x40] sm:$0xff] }
   0x9   :  { %1359 = vmatpush3.msra.mxu0 %v58_v4  ;;  %1508 = vmatprep.subr.mxu1 %v490_v13  ;;  %v32_v24 = vld [vmem:[%s2551_s0 + $0x60] sm:$0xff]  ;;  %v484_v25 = vld [vmem:[%s2552_s3 + $0x38] sm:$0xff]  ;;  %v33_v26 = vld [vmem:[%s2551_s0 + $0x68] sm:$0xff] }
   0xa   :  { %1361 = vmatmul.mubr.msk.f32.vlgmr.msra.gmra.mxu0 %vm69_vm0, %v21_v5  ;;  %1417 = vmatprep.subr.mxu0 %v492_v10  ;;  %v483_v27 = vld [vmem:[%s2552_s3 + $0x30] sm:$0xff]  ;;  %v482_v29 = vld [vmem:[%s2552_s3 + $0x28] sm:$0xff]  ;;  %v35_v30 = vld [vmem:[%s2551_s0 + $0x78] sm:$0xff] }
   0xb   :  { %1363 = vmatprep.mubr.msk.f32.mxu0 %vm69_vm0, %v22_v6  ;;  %1418 = vmatpush3.msra.mxu0 %v492_v10  ;;  %v34_v28 = vld [vmem:[%s2551_s0 + $0x70] sm:$0xff]  ;;  %v481_v31 = vld [vmem:[%s2552_s3 + $0x20] sm:$0xff]  ;;  %v480_v33 = vld [vmem:[%s2552_s3 + $0x18] sm:$0xff] }
   0xc   :  { %1419 = vmatprep.subr.mxu0 %v491_v11  ;;  %1524 = vmatpush3.msra.mxu1 %v490_v13  ;;  %v36_v32 = vld [vmem:[%s2551_s0 + $0x80] sm:$0xff]  ;;  %v37_v34 = vld [vmem:[%s2551_s0 + $0x88] sm:$0xff]  ;;  %v479_v35 = vld [vmem:[%s2552_s3 + $0x10] sm:$0xff] }
   0xd   :  { %1420 = vmatpush3.msra.mxu0 %v491_v11  ;;  %1509 = vmatprep.subr.mxu1 %v489_v15  ;;  %v38_v36 = vld [vmem:[%s2551_s0 + $0x90] sm:$0xff]  ;;  %v478_v37 = vld [vmem:[%s2552_s3 + $0x8] sm:$0xff]  ;;  %v39_v38 = vld [vmem:[%s2551_s0 + $0x98] sm:$0xff] }
   0xe   :  { %1364 = vmatmul.mubr.msk.f32.gmra.mxu0 %vm69_vm0, %v23_v7  ;;  %1421 = vmatprep.subr.mxu0 %v490_v13  ;;  %v40_v39 = vld [vmem:[%s2551_s0 + $0xa0] sm:$0xff]  ;;  %v41_v40 = vld [vmem:[%s2551_s0 + $0xa8] sm:$0xff]  ;;  %v42_v41 = vld [vmem:[%s2551_s0 + $0xb0] sm:$0xff] }
   0xf   :  { %1366 = vmatprep.mubr.msk.f32.mxu0 %vm69_vm0, %v24_v8  ;;  %1422 = vmatpush3.msra.mxu0 %v490_v13  ;;  %v43_v42 = vld [vmem:[%s2551_s0 + $0xb8] sm:$0xff]  ;;  %v44_v43 = vld [vmem:[%s2551_s0 + $0xc0] sm:$0xff]  ;;  %v45_v44 = vld [vmem:[%s2551_s0 + $0xc8] sm:$0xff] }
  0x10   :  { %1423 = vmatprep.subr.mxu0 %v489_v15  ;;  %1525 = vmatpush3.msra.mxu1 %v489_v15  ;;  %v46_v45 = vld [vmem:[%s2551_s0 + $0xd0] sm:$0xff]  ;;  %v47_v46 = vld [vmem:[%s2551_s0 + $0xd8] sm:$0xff]  ;;  %v48_v47 = vld [vmem:[%s2551_s0 + $0xe0] sm:$0xff] }
  0x11   :  { %1424 = vmatpush3.msra.mxu0 %v489_v15  ;;  %1510 = vmatprep.subr.mxu1 %v488_v17  ;;  %v49_v48 = vld [vmem:[%s2551_s0 + $0xe8] sm:$0xff]  ;;  %v50_v49 = vld [vmem:[%s2551_s0 + $0xf0] sm:$0xff]  ;;  %v51_v50 = vld [vmem:[%s2551_s0 + $0xf8] sm:$0xff] }
  0x12   :  { %1367 = vmatmul.mubr.msk.f32.gmra.mxu0 %vm69_vm0, %v25_v9  ;;  %1425 = vmatprep.subr.mxu0 %v488_v17  ;;  %v52_v51 = vld [vmem:[%s2551_s0 + $0x100] sm:$0xff]  ;;  %v53_v52 = vld [vmem:[%s2551_s0 + $0x108] sm:$0xff]  ;;  %v54_v53 = vld [vmem:[%s2551_s0 + $0x110] sm:$0xff] }
  0x13   :  { %1369 = vmatprep.mubr.msk.f32.mxu0 %vm69_vm0, %v26_v12  ;;  %1426 = vmatpush3.msra.mxu0 %v488_v17  ;;  %v55_v54 = vld [vmem:[%s2551_s0 + $0x118] sm:$0xff]  ;;  %v56_v55 = vld [vmem:[%s2551_s0 + $0x120] sm:$0xff]  ;;  %v57_v56 = vld [vmem:[%s2551_s0 + $0x128] sm:$0xff] }
  0x14   :  { %1427 = vmatprep.subr.mxu0 %v487_v19  ;;  %1526 = vmatpush3.msra.mxu1 %v488_v17  ;;  %v477_v57 = vld [vmem:[%s2552_s3] sm:$0xff] }
  0x15   :  { %1428 = vmatpush3.msra.mxu0 %v487_v19  ;;  %1511 = vmatprep.subr.mxu1 %v487_v19  ;;  %v1935_v58 = vld [vmem:[%s2553_s2] ss:$0 sm:$0xff] }
  0x16   :  { %1370 = vmatmul.mubr.msk.f32.gmra.mxu0 %vm69_vm0, %v27_v14  ;;  %1429 = vmatprep.subr.mxu0 %v486_v21 }
  0x17   :  { %1372 = vmatprep.mubr.msk.f32.mxu0 %vm69_vm0, %v28_v16  ;;  %1430 = vmatpush3.msra.mxu0 %v486_v21 }
  0x18   :  { %1431 = vmatprep.subr.mxu0 %v485_v23  ;;  %1527 = vmatpush3.msra.mxu1 %v487_v19 }
  0x19   :  { %1432 = vmatpush3.msra.mxu0 %v485_v23  ;;  %1512 = vmatprep.subr.mxu1 %v486_v21 }
  0x1a   :  { %1373 = vmatmul.mubr.msk.f32.gmra.mxu0 %vm69_vm0, %v29_v18  ;;  %1433 = vmatprep.subr.mxu0 %v484_v25 }
  0x1b   :  { %1375 = vmatprep.mubr.msk.f32.mxu0 %vm69_vm0, %v30_v20  ;;  %1434 = vmatpush3.msra.mxu0 %v484_v25 }
  0x1c   :  { %1435 = vmatprep.subr.mxu0 %v483_v27  ;;  %1528 = vmatpush3.msra.mxu1 %v486_v21 }
  0x1d   :  { %1436 = vmatpush3.msra.mxu0 %v483_v27  ;;  %1513 = vmatprep.subr.mxu1 %v485_v23 }
  0x1e   :  { %1376 = vmatmul.mubr.msk.f32.gmra.mxu0 %vm69_vm0, %v31_v22  ;;  %1437 = vmatprep.subr.mxu0 %v482_v29 }
  0x1f   :  { %1378 = vmatprep.mubr.msk.f32.mxu0 %vm69_vm0, %v32_v24  ;;  %1438 = vmatpush3.msra.mxu0 %v482_v29 }
  0x20   :  { %1439 = vmatprep.subr.mxu0 %v481_v31  ;;  %1529 = vmatpush3.msra.mxu1 %v485_v23 }
  0x21   :  { %1440 = vmatpush3.msra.mxu0 %v481_v31  ;;  %1514 = vmatprep.subr.mxu1 %v484_v25 }
  0x22   :  { %1379 = vmatmul.mubr.msk.f32.gmra.mxu0 %vm69_vm0, %v33_v26  ;;  %1441 = vmatprep.subr.mxu0 %v480_v33 }
  0x23   :  { %1381 = vmatprep.mubr.msk.f32.mxu0 %vm69_vm0, %v34_v28  ;;  %1442 = vmatpush3.msra.mxu0 %v480_v33 }
  0x24   :  { %1443 = vmatprep.subr.mxu0 %v479_v35  ;;  %1530 = vmatpush3.msra.mxu1 %v484_v25 }
  0x25   :  { %1444 = vmatpush3.msra.mxu0 %v479_v35  ;;  %1515 = vmatprep.subr.mxu1 %v483_v27 }
  0x26   :  { %1382 = vmatmul.mubr.msk.f32.gmra.mxu0 %vm69_vm0, %v35_v30  ;;  %1445 = vmatprep.subr.mxu0 %v478_v37 }
  0x27   :  { %1384 = vmatprep.mubr.msk.f32.mxu0 %vm69_vm0, %v36_v32  ;;  %1446 = vmatpush3.msra.mxu0 %v478_v37 }
  0x28   :  { %1531 = vmatpush3.msra.mxu1 %v483_v27  ;;  %1447 = vmatprep.subr.mxu0 %v477_v57 }
  0x29   :  { %1516 = vmatprep.subr.mxu1 %v482_v29  ;;  %1448 = vmatpush3.msra.mxu0 %v477_v57 }
  0x2a   :  { %1385 = vmatmul.mubr.msk.f32.gmra.mxu0 %vm69_vm0, %v37_v34  ;;  %1532 = vmatpush3.msra.mxu1 %v482_v29 }
  0x2b   :  { %1387 = vmatprep.mubr.msk.f32.mxu0 %vm69_vm0, %v38_v36  ;;  %1517 = vmatprep.subr.mxu1 %v481_v31 }
  0x2c   :  { %1533 = vmatpush3.msra.mxu1 %v481_v31 }
  0x2d   :  { %1518 = vmatprep.subr.mxu1 %v480_v33 }
  0x2e   :  { %1388 = vmatmul.mubr.msk.f32.gmra.mxu0 %vm69_vm0, %v39_v38  ;;  %1534 = vmatpush3.msra.mxu1 %v480_v33 }
  0x2f   :  { %1390 = vmatprep.mubr.msk.f32.mxu0 %vm69_vm0, %v40_v39  ;;  %1519 = vmatprep.subr.mxu1 %v479_v35 }
  0x30   :  { %1535 = vmatpush3.msra.mxu1 %v479_v35 }
  0x31   :  { %1520 = vmatprep.subr.mxu1 %v478_v37 }
  0x32   :  { %1391 = vmatmul.mubr.msk.f32.gmra.mxu0 %vm69_vm0, %v41_v40  ;;  %1536 = vmatpush3.msra.mxu1 %v478_v37 }
  0x33   :  { %1393 = vmatprep.mubr.msk.f32.mxu0 %vm69_vm0, %v42_v41  ;;  %1521 = vmatprep.subr.mxu1 %v477_v57 }
  0x34   :  { %1537 = vmatpush3.msra.mxu1 %v477_v57 }
  0x36   :  { %1394 = vmatmul.mubr.msk.f32.gmra.mxu0 %vm69_vm0, %v43_v42 }
  0x37   :  { %1396 = vmatprep.mubr.msk.f32.mxu0 %vm69_vm0, %v44_v43 }
  0x3a   :  { %1397 = vmatmul.mubr.msk.f32.gmra.mxu0 %vm69_vm0, %v45_v44 }
  0x3b   :  { %1399 = vmatprep.mubr.msk.f32.mxu0 %vm69_vm0, %v46_v45 }
  0x3e   :  { %1400 = vmatmul.mubr.msk.f32.gmra.mxu0 %vm69_vm0, %v47_v46 }
  0x3f   :  { %1402 = vmatprep.mubr.msk.f32.mxu0 %vm69_vm0, %v48_v47 }
  0x42   :  { %1403 = vmatmul.mubr.msk.f32.gmra.mxu0 %vm69_vm0, %v49_v48 }
  0x43   :  { %1405 = vmatprep.mubr.msk.f32.mxu0 %vm69_vm0, %v50_v49 }
  0x46   :  { %1406 = vmatmul.mubr.msk.f32.gmra.mxu0 %vm69_vm0, %v51_v50 }
  0x47   :  { %1408 = vmatprep.mubr.msk.f32.mxu0 %vm69_vm0, %v52_v51 }
  0x4a   :  { %1409 = vmatmul.mubr.msk.f32.gmra.mxu0 %vm69_vm0, %v53_v52 }
  0x4b   :  { %1411 = vmatprep.mubr.msk.f32.mxu0 %vm69_vm0, %v54_v53 }
  0x4e   :  { %1412 = vmatmul.mubr.msk.f32.gmra.mxu0 %vm69_vm0, %v55_v54 }
  0x4f   :  { %1414 = vmatprep.mubr.msk.f32.mxu0 %vm69_vm0, %v56_v55 }
  0x52   :  { %1415 = vmatmul.mubr.msk.f32.gmra.mxu0 %vm69_vm0, %v57_v56 }
  0xca   :  { %v1362_v59 = vpop.f32.mrf.mxu0 }
  0xcb   :  { %v256_v60 = vadd.f32 %v1362_v59, %v1935_v58 }
  0xcc   :  { %v250_v61 = vpop.f32.mrf.mxu0 }
  0xcd   :  { %v251_v62 = vadd.f32 %v1935_v58, %v250_v61  ;;  %v440_v1 = vmax.f32 %v256_v60, 0.0 }
  0xce   :  { %v1365_v63 = vpop.f32.mrf.mxu0 }
  0xcf   :  { %v439_v0 = vmax.f32 %v251_v62, 0.0  ;;  %v266_v2 = vadd.f32 %v1365_v63, %v1935_v58 }
  0xd0   :  { %v260_v3 = vpop.f32.mrf.mxu0 }
  0xd1   :  { %v261_v4 = vadd.f32 %v1935_v58, %v260_v3  ;;  %1449 = vmatprep.mubr.f32.mxu0 %v439_v0  ;;  %v442_v8 = vmax.f32 %v266_v2, 0.0 }
  0xd2   :  { %v1368_v5 = vpop.f32.mrf.mxu0  ;;  %1450 = vmatmul.mubr.f32.vlgmr.msra.gmra.mxu0 %v440_v1 }
  0xd3   :  { %v441_v6 = vmax.f32 %v261_v4, 0.0  ;;  %v276_v7 = vadd.f32 %v1368_v5, %v1935_v58 }
  0xd4   :  { %v270_v9 = vpop.f32.mrf.mxu0 }
  0xd5   :  { %v271_v10 = vadd.f32 %v1935_v58, %v270_v9  ;;  %1452 = vmatprep.mubr.f32.mxu0 %v441_v6  ;;  %v444_v11 = vmax.f32 %v276_v7, 0.0 }
  0xd6   :  { %v1371_v12 = vpop.f32.mrf.mxu0  ;;  %1453 = vmatmul.mubr.f32.gmra.mxu0 %v442_v8 }
  0xd7   :  { %v443_v13 = vmax.f32 %v271_v10, 0.0  ;;  %v286_v14 = vadd.f32 %v1371_v12, %v1935_v58 }
  0xd8   :  { %v280_v15 = vpop.f32.mrf.mxu0 }
  0xd9   :  { %1455 = vmatprep.mubr.f32.mxu0 %v443_v13  ;;  %v281_v16 = vadd.f32 %v1935_v58, %v280_v15  ;;  %v446_v17 = vmax.f32 %v286_v14, 0.0 }
  0xda   :  { %v1374_v18 = vpop.f32.mrf.mxu0  ;;  %1456 = vmatmul.mubr.f32.gmra.mxu0 %v444_v11 }
  0xdb   :  { %v296_v19 = vadd.f32 %v1374_v18, %v1935_v58  ;;  %v445_v20 = vmax.f32 %v281_v16, 0.0 }
  0xdc   :  { %v290_v21 = vpop.f32.mrf.mxu0 }
  0xdd   :  { %v291_v22 = vadd.f32 %v1935_v58, %v290_v21  ;;  %1458 = vmatprep.mubr.f32.mxu1 %v445_v20  ;;  %v448_v23 = vmax.f32 %v296_v19, 0.0 }
  0xde   :  { %v1377_v24 = vpop.f32.mrf.mxu0  ;;  %1459 = vmatmul.mubr.f32.vlgmr.msra.gmra.mxu1 %v446_v17 }
  0xdf   :  { %v447_v25 = vmax.f32 %v291_v22, 0.0  ;;  %v306_v26 = vadd.f32 %v1377_v24, %v1935_v58 }
  0xe0   :  { %v300_v27 = vpop.f32.mrf.mxu0 }
  0xe1   :  { %v301_v28 = vadd.f32 %v1935_v58, %v300_v27  ;;  %1461 = vmatprep.mubr.f32.mxu1 %v447_v25  ;;  %v450_v29 = vmax.f32 %v306_v26, 0.0 }
  0xe2   :  { %v1380_v30 = vpop.f32.mrf.mxu0  ;;  %1462 = vmatmul.mubr.f32.gmra.mxu1 %v448_v23 }
  0xe3   :  { %v449_v31 = vmax.f32 %v301_v28, 0.0  ;;  %v316_v32 = vadd.f32 %v1380_v30, %v1935_v58 }
  0xe4   :  { %v310_v33 = vpop.f32.mrf.mxu0 }
  0xe5   :  { %v311_v34 = vadd.f32 %v1935_v58, %v310_v33  ;;  %1464 = vmatprep.mubr.f32.mxu1 %v449_v31  ;;  %v452_v35 = vmax.f32 %v316_v32, 0.0 }
  0xe6   :  { %v1383_v36 = vpop.f32.mrf.mxu0  ;;  %1465 = vmatmul.mubr.f32.gmra.mxu1 %v450_v29 }
  0xe7   :  { %v451_v37 = vmax.f32 %v311_v34, 0.0  ;;  %v326_v38 = vadd.f32 %v1383_v36, %v1935_v58 }
  0xe8   :  { %v320_v39 = vpop.f32.mrf.mxu0 }
  0xe9   :  { %v321_v40 = vadd.f32 %v1935_v58, %v320_v39  ;;  %1467 = vmatprep.mubr.f32.mxu1 %v451_v37  ;;  %v454_v41 = vmax.f32 %v326_v38, 0.0 }
  0xea   :  { %v1386_v42 = vpop.f32.mrf.mxu0  ;;  %1468 = vmatmul.mubr.f32.gmra.mxu1 %v452_v35 }
  0xeb   :  { %v453_v43 = vmax.f32 %v321_v40, 0.0  ;;  %v336_v44 = vadd.f32 %v1386_v42, %v1935_v58 }
  0xec   :  { %v330_v45 = vpop.f32.mrf.mxu0 }
  0xed   :  { %v331_v46 = vadd.f32 %v1935_v58, %v330_v45  ;;  %1470 = vmatprep.mubr.f32.mxu1 %v453_v43  ;;  %v456_v47 = vmax.f32 %v336_v44, 0.0 }
  0xee   :  { %v1389_v48 = vpop.f32.mrf.mxu0  ;;  %1471 = vmatmul.mubr.f32.gmra.mxu1 %v454_v41 }
  0xef   :  { %v455_v49 = vmax.f32 %v331_v46, 0.0  ;;  %v346_v50 = vadd.f32 %v1389_v48, %v1935_v58  ;;  %v1978_v46 = vld [vmem:[%s2554_s4] ss:$0 sm:$0xff] }
  0xf0   :  { %v340_v51 = vpop.f32.mrf.mxu0 }
  0xf1   :  { %v341_v52 = vadd.f32 %v1935_v58, %v340_v51  ;;  %1473 = vmatprep.mubr.f32.mxu1 %v455_v49  ;;  %v458_v53 = vmax.f32 %v346_v50, 0.0 }
  0xf2   :  { %v1392_v54 = vpop.f32.mrf.mxu0  ;;  %1474 = vmatmul.mubr.f32.gmra.mxu1 %v456_v47 }
  0xf3   :  { %v457_v55 = vmax.f32 %v341_v52, 0.0  ;;  %v356_v56 = vadd.f32 %v1392_v54, %v1935_v58 }
  0xf4   :  { %v350_v57 = vpop.f32.mrf.mxu0 }
  0xf5   :  { %v351_v59 = vadd.f32 %v1935_v58, %v350_v57  ;;  %1476 = vmatprep.mubr.f32.mxu1 %v457_v55  ;;  %v460_v60 = vmax.f32 %v356_v56, 0.0 }
  0xf6   :  { %v1395_v61 = vpop.f32.mrf.mxu0  ;;  %1477 = vmatmul.mubr.f32.gmra.mxu1 %v458_v53 }
  0xf7   :  { %v459_v62 = vmax.f32 %v351_v59, 0.0  ;;  %v366_v63 = vadd.f32 %v1395_v61, %v1935_v58 }
  0xf8   :  { %v360_v0 = vpop.f32.mrf.mxu0 }
  0xf9   :  { %v361_v1 = vadd.f32 %v1935_v58, %v360_v0  ;;  %1479 = vmatprep.mubr.f32.mxu1 %v459_v62  ;;  %v462_v2 = vmax.f32 %v366_v63, 0.0 }
  0xfa   :  { %v1398_v3 = vpop.f32.mrf.mxu0  ;;  %1480 = vmatmul.mubr.f32.gmra.mxu1 %v460_v60 }
  0xfb   :  { %v461_v4 = vmax.f32 %v361_v1, 0.0  ;;  %v376_v5 = vadd.f32 %v1398_v3, %v1935_v58 }
  0xfc   :  { %v370_v6 = vpop.f32.mrf.mxu0 }
  0xfd   :  { %v371_v7 = vadd.f32 %v1935_v58, %v370_v6  ;;  %1482 = vmatprep.mubr.f32.mxu1 %v461_v4  ;;  %v464_v8 = vmax.f32 %v376_v5, 0.0 }
  0xfe   :  { %v1401_v9 = vpop.f32.mrf.mxu0  ;;  %1483 = vmatmul.mubr.f32.gmra.mxu1 %v462_v2 }
  0xff   :  { %v463_v10 = vmax.f32 %v371_v7, 0.0  ;;  %v386_v11 = vadd.f32 %v1401_v9, %v1935_v58 }
 0x100   :  { %v380_v12 = vpop.f32.mrf.mxu0 }
 0x101   :  { %v381_v13 = vadd.f32 %v1935_v58, %v380_v12  ;;  %1485 = vmatprep.mubr.f32.mxu1 %v463_v10  ;;  %v466_v14 = vmax.f32 %v386_v11, 0.0 }
 0x102   :  { %v1404_v15 = vpop.f32.mrf.mxu0  ;;  %1486 = vmatmul.mubr.f32.gmra.mxu1 %v464_v8 }
 0x103   :  { %v465_v16 = vmax.f32 %v381_v13, 0.0  ;;  %v396_v17 = vadd.f32 %v1404_v15, %v1935_v58 }
 0x104   :  { %v390_v18 = vpop.f32.mrf.mxu0 }
 0x105   :  { %v391_v19 = vadd.f32 %v1935_v58, %v390_v18  ;;  %1488 = vmatprep.mubr.f32.mxu1 %v465_v16  ;;  %v468_v20 = vmax.f32 %v396_v17, 0.0 }
 0x106   :  { %v1407_v21 = vpop.f32.mrf.mxu0  ;;  %1489 = vmatmul.mubr.f32.gmra.mxu1 %v466_v14 }
 0x107   :  { %v467_v22 = vmax.f32 %v391_v19, 0.0  ;;  %v406_v23 = vadd.f32 %v1407_v21, %v1935_v58 }
 0x108   :  { %v400_v24 = vpop.f32.mrf.mxu0 }
 0x109   :  { %v401_v25 = vadd.f32 %v1935_v58, %v400_v24  ;;  %1491 = vmatprep.mubr.f32.mxu1 %v467_v22  ;;  %v470_v26 = vmax.f32 %v406_v23, 0.0 }
 0x10a   :  { %v1410_v27 = vpop.f32.mrf.mxu0  ;;  %1492 = vmatmul.mubr.f32.gmra.mxu1 %v468_v20 }
 0x10b   :  { %v469_v28 = vmax.f32 %v401_v25, 0.0  ;;  %v416_v29 = vadd.f32 %v1410_v27, %v1935_v58 }
 0x10c   :  { %v410_v30 = vpop.f32.mrf.mxu0 }
 0x10d   :  { %v411_v31 = vadd.f32 %v1935_v58, %v410_v30  ;;  %1494 = vmatprep.mubr.f32.mxu1 %v469_v28  ;;  %v472_v32 = vmax.f32 %v416_v29, 0.0 }
 0x10e   :  { %v1413_v33 = vpop.f32.mrf.mxu0  ;;  %1495 = vmatmul.mubr.f32.gmra.mxu1 %v470_v26 }
 0x10f   :  { %v471_v34 = vmax.f32 %v411_v31, 0.0  ;;  %v426_v35 = vadd.f32 %v1413_v33, %v1935_v58 }
 0x110   :  { %v420_v36 = vpop.f32.mrf.mxu0 }
 0x111   :  { %v421_v37 = vadd.f32 %v1935_v58, %v420_v36  ;;  %1497 = vmatprep.mubr.f32.mxu1 %v471_v34  ;;  %v474_v38 = vmax.f32 %v426_v35, 0.0 }
 0x112   :  { %v1416_v39 = vpop.f32.mrf.mxu0  ;;  %1498 = vmatmul.mubr.f32.gmra.mxu1 %v472_v32 }
 0x113   :  { %v473_v40 = vmax.f32 %v421_v37, 0.0  ;;  %v436_v41 = vadd.f32 %v1416_v39, %v1935_v58 }
 0x114   :  { %v430_v42 = vpop.f32.mrf.mxu0 }
 0x115   :  { %v431_v43 = vadd.f32 %v1935_v58, %v430_v42  ;;  %1500 = vmatprep.mubr.f32.mxu1 %v473_v40  ;;  %v476_v44 = vmax.f32 %v436_v41, 0.0 }
 0x116   :  { %1501 = vmatmul.mubr.f32.gmra.mxu1 %v474_v38 }
 0x117   :  { %v475_v45 = vmax.f32 %v431_v43, 0.0 }
 0x119   :  { %1503 = vmatprep.mubr.f32.mxu1 %v475_v45 }
 0x11a   :  { %1504 = vmatmul.mubr.f32.gmra.mxu1 %v476_v44 }
 0x192   :  { %v1451_v47 = vpop.f32.mrf.mxu0 }
 0x193   :  { %v1981_v48 = vadd.f32 %v1451_v47, %v1978_v46 }
 0x194   :  { %v566_v49 = vpop.f32.mrf.mxu0 }
 0x195   :  { %v1984_v50 = vadd.f32 %v1978_v46, %v566_v49  ;;  %v759_v58 = vsel %vm755_vm1, %v1981_v48, -inf }
 0x196   :  { %760 = vmax.xlane.f32.xlu0 %v759_v58  ;;  %v1454_v51 = vpop.f32.mrf.mxu0 }
 0x197   :  { %v1989_v52 = vadd.f32 %v1454_v51, %v1978_v46  ;;  %v756_v56 = vsel %vm755_vm1, %v1984_v50, -inf }
 0x198   :  { %v576_v53 = vpop.f32.mrf.mxu0 }
 0x199   :  { %v1992_v54 = vadd.f32 %v1978_v46, %v576_v53  ;;  %v765_v55 = vsel %vm755_vm1, %v1989_v52, -inf }
 0x19a   :  { %766 = vmax.xlane.f32.xlu1 %v765_v55  ;;  %v1457_v57 = vpop.f32.mrf.mxu0  ;;  %757 = vmax.xlane.f32.xlu0 %v756_v56 }
 0x19b   :  { %v1999_v60 = vadd.f32 %v1457_v57, %v1978_v46  ;;  %v762_v62 = vsel %vm755_vm1, %v1992_v54, -inf }
 0x19c   :  { %v586_v59 = vpop.f32.mrf.mxu0 }
 0x19d   :  { %v2002_v61 = vadd.f32 %v1978_v46, %v586_v59  ;;  %v771_v4 = vsel %vm755_vm1, %v1999_v60, -inf }
 0x19e   :  { %v1460_v63 = vpop.f32.mrf.mxu1  ;;  %763 = vmax.xlane.f32.xlu1 %v762_v62 }
 0x19f   :  { %v768_v0 = vsel %vm755_vm1, %v2002_v61, -inf  ;;  %v2009_v2 = vadd.f32 %v1460_v63, %v1978_v46 }
 0x1a0   :  { %v596_v1 = vpop.f32.mrf.mxu1  ;;  %769 = vmax.xlane.f32.xlu0 %v768_v0 }
 0x1a1   :  { %v2012_v3 = vadd.f32 %v1978_v46, %v596_v1  ;;  %v777_v10 = vsel %vm755_vm1, %v2009_v2, -inf }
 0x1a2   :  { %v1463_v5 = vpop.f32.mrf.mxu1  ;;  %772 = vmax.xlane.f32.xlu1 %v771_v4 }
 0x1a3   :  { %v774_v6 = vsel %vm755_vm1, %v2012_v3, -inf  ;;  %v2019_v8 = vadd.f32 %v1463_v5, %v1978_v46 }
 0x1a4   :  { %v606_v7 = vpop.f32.mrf.mxu1  ;;  %775 = vmax.xlane.f32.xlu0 %v774_v6 }
 0x1a5   :  { %v2022_v9 = vadd.f32 %v1978_v46, %v606_v7  ;;  %v783_v16 = vsel %vm755_vm1, %v2019_v8, -inf }
 0x1a6   :  { %v1466_v11 = vpop.f32.mrf.mxu1  ;;  %778 = vmax.xlane.f32.xlu1 %v777_v10 }
 0x1a7   :  { %v780_v12 = vsel %vm755_vm1, %v2022_v9, -inf  ;;  %v2029_v14 = vadd.f32 %v1466_v11, %v1978_v46 }
 0x1a8   :  { %v616_v13 = vpop.f32.mrf.mxu1  ;;  %781 = vmax.xlane.f32.xlu0 %v780_v12 }
 0x1a9   :  { %v2032_v15 = vadd.f32 %v1978_v46, %v616_v13  ;;  %v789_v22 = vsel %vm755_vm1, %v2029_v14, -inf }
 0x1aa   :  { %v1469_v17 = vpop.f32.mrf.mxu1  ;;  %784 = vmax.xlane.f32.xlu1 %v783_v16 }
 0x1ab   :  { %v786_v18 = vsel %vm755_vm1, %v2032_v15, -inf  ;;  %v2039_v20 = vadd.f32 %v1469_v17, %v1978_v46 }
 0x1ac   :  { %v626_v19 = vpop.f32.mrf.mxu1  ;;  %787 = vmax.xlane.f32.xlu0 %v786_v18 }
 0x1ad   :  { %v2042_v21 = vadd.f32 %v1978_v46, %v626_v19  ;;  %v795_v28 = vsel %vm755_vm1, %v2039_v20, -inf }
 0x1ae   :  { %v1472_v23 = vpop.f32.mrf.mxu1  ;;  %790 = vmax.xlane.f32.xlu1 %v789_v22 }
 0x1af   :  { %v792_v24 = vsel %vm755_vm1, %v2042_v21, -inf  ;;  %v2049_v26 = vadd.f32 %v1472_v23, %v1978_v46 }
 0x1b0   :  { %v636_v25 = vpop.f32.mrf.mxu1  ;;  %793 = vmax.xlane.f32.xlu0 %v792_v24 }
 0x1b1   :  { %v2052_v27 = vadd.f32 %v1978_v46, %v636_v25  ;;  %v801_v34 = vsel %vm755_vm1, %v2049_v26, -inf }
 0x1b2   :  { %v1475_v29 = vpop.f32.mrf.mxu1  ;;  %796 = vmax.xlane.f32.xlu1 %v795_v28 }
 0x1b3   :  { %v798_v30 = vsel %vm755_vm1, %v2052_v27, -inf  ;;  %v2059_v32 = vadd.f32 %v1475_v29, %v1978_v46 }
 0x1b4   :  { %v646_v31 = vpop.f32.mrf.mxu1  ;;  %799 = vmax.xlane.f32.xlu0 %v798_v30 }
 0x1b5   :  { %v2062_v33 = vadd.f32 %v1978_v46, %v646_v31  ;;  %v807_v40 = vsel %vm755_vm1, %v2059_v32, -inf }
 0x1b6   :  { %v1478_v35 = vpop.f32.mrf.mxu1  ;;  %802 = vmax.xlane.f32.xlu1 %v801_v34 }
 0x1b7   :  { %v804_v36 = vsel %vm755_vm1, %v2062_v33, -inf  ;;  %v2069_v38 = vadd.f32 %v1478_v35, %v1978_v46 }
 0x1b8   :  { %v656_v37 = vpop.f32.mrf.mxu1  ;;  %805 = vmax.xlane.f32.xlu0 %v804_v36 }
 0x1b9   :  { %v2072_v39 = vadd.f32 %v1978_v46, %v656_v37  ;;  %v813_v47 = vsel %vm755_vm1, %v2069_v38, -inf }
 0x1ba   :  { %v1481_v41 = vpop.f32.mrf.mxu1  ;;  %808 = vmax.xlane.f32.xlu1 %v807_v40 }
 0x1bb   :  { %v810_v42 = vsel %vm755_vm1, %v2072_v39, -inf  ;;  %v2079_v44 = vadd.f32 %v1481_v41, %v1978_v46 }
 0x1bc   :  { %v666_v43 = vpop.f32.mrf.mxu1  ;;  %811 = vmax.xlane.f32.xlu0 %v810_v42 }
 0x1bd   :  { %v2082_v45 = vadd.f32 %v1978_v46, %v666_v43  ;;  %v819_v56 = vsel %vm755_vm1, %v2079_v44, -inf }
 0x1be   :  { %v1484_v49 = vpop.f32.mrf.mxu1  ;;  %814 = vmax.xlane.f32.xlu1 %v813_v47 }
 0x1bf   :  { %v816_v58 = vsel %vm755_vm1, %v2082_v45, -inf  ;;  %v2089_v53 = vadd.f32 %v1484_v49, %v1978_v46 }
 0x1c0   :  { %v676_v51 = vpop.f32.mrf.mxu1  ;;  %817 = vmax.xlane.f32.xlu0 %v816_v58 }
 0x1c1   :  { %v2092_v55 = vadd.f32 %v1978_v46, %v676_v51  ;;  %v825_v1 = vsel %vm755_vm1, %v2089_v53, -inf }
 0x1c2   :  { %v1487_v57 = vpop.f32.mrf.mxu1  ;;  %820 = vmax.xlane.f32.xlu1 %v819_v56 }
 0x1c3   :  { %v822_v59 = vsel %vm755_vm1, %v2092_v55, -inf  ;;  %v2099_v63 = vadd.f32 %v1487_v57, %v1978_v46 }
 0x1c4   :  { %v686_v62 = vpop.f32.mrf.mxu1  ;;  %823 = vmax.xlane.f32.xlu0 %v822_v59 }
 0x1c5   :  { %v2102_v0 = vadd.f32 %v1978_v46, %v686_v62  ;;  %v831_v11 = vsel %vm755_vm1, %v2099_v63, -inf }
 0x1c6   :  { %v1490_v4 = vpop.f32.mrf.mxu1  ;;  %826 = vmax.xlane.f32.xlu1 %v825_v1 }
 0x1c7   :  { %v828_v5 = vsel %vm755_vm1, %v2102_v0, -inf  ;;  %v2109_v7 = vadd.f32 %v1490_v4, %v1978_v46 }
 0x1c8   :  { %v696_v6 = vpop.f32.mrf.mxu1  ;;  %829 = vmax.xlane.f32.xlu0 %v828_v5 }
 0x1c9   :  { %v2112_v10 = vadd.f32 %v1978_v46, %v696_v6  ;;  %v837_v19 = vsel %vm755_vm1, %v2109_v7, -inf }
 0x1ca   :  { %v1493_v12 = vpop.f32.mrf.mxu1  ;;  %832 = vmax.xlane.f32.xlu1 %v831_v11 }
 0x1cb   :  { %v834_v13 = vsel %vm755_vm1, %v2112_v10, -inf  ;;  %v2119_v17 = vadd.f32 %v1493_v12, %v1978_v46 }
 0x1cc   :  { %v706_v16 = vpop.f32.mrf.mxu1  ;;  %835 = vmax.xlane.f32.xlu0 %v834_v13 }
 0x1cd   :  { %v2122_v18 = vadd.f32 %v1978_v46, %v706_v16  ;;  %v843_v29 = vsel %vm755_vm1, %v2119_v17, -inf }
 0x1ce   :  { %v1496_v22 = vpop.f32.mrf.mxu1  ;;  %838 = vmax.xlane.f32.xlu1 %v837_v19 }
 0x1cf   :  { %v840_v23 = vsel %vm755_vm1, %v2122_v18, -inf  ;;  %v2129_v25 = vadd.f32 %v1496_v22, %v1978_v46 }
 0x1d0   :  { %v716_v24 = vpop.f32.mrf.mxu1  ;;  %841 = vmax.xlane.f32.xlu0 %v840_v23 }
 0x1d1   :  { %v2132_v28 = vadd.f32 %v1978_v46, %v716_v24  ;;  %v849_v37 = vsel %vm755_vm1, %v2129_v25, -inf }
 0x1d2   :  { %v1499_v30 = vpop.f32.mrf.mxu1  ;;  %844 = vmax.xlane.f32.xlu1 %v843_v29 }
 0x1d3   :  { %v846_v31 = vsel %vm755_vm1, %v2132_v28, -inf  ;;  %v2139_v35 = vadd.f32 %v1499_v30, %v1978_v46 }
 0x1d4   :  { %v726_v34 = vpop.f32.mrf.mxu1  ;;  %847 = vmax.xlane.f32.xlu0 %v846_v31 }
 0x1d5   :  { %v2142_v36 = vadd.f32 %v1978_v46, %v726_v34  ;;  %v855_v49 = vsel %vm755_vm1, %v2139_v35, -inf }
 0x1d6   :  { %v1502_v40 = vpop.f32.mrf.mxu1  ;;  %850 = vmax.xlane.f32.xlu1 %v849_v37 }
 0x1d7   :  { %v852_v41 = vsel %vm755_vm1, %v2142_v36, -inf  ;;  %v2149_v43 = vadd.f32 %v1502_v40, %v1978_v46 }
 0x1d8   :  { %v736_v42 = vpop.f32.mrf.mxu1  ;;  %853 = vmax.xlane.f32.xlu0 %v852_v41 }
 0x1d9   :  { %v2152_v47 = vadd.f32 %v1978_v46, %v736_v42  ;;  %v861_v62 = vsel %vm755_vm1, %v2149_v43, -inf }
 0x1da   :  { %v1505_v58 = vpop.f32.mrf.mxu1  ;;  %856 = vmax.xlane.f32.xlu1 %v855_v49 }
 0x1db   :  { %v858_v51 = vsel %vm755_vm1, %v2152_v47, -inf  ;;  %v2159_v57 = vadd.f32 %v1505_v58, %v1978_v46 }
 0x1dc   :  { %v746_v56 = vpop.f32.mrf.mxu1  ;;  %859 = vmax.xlane.f32.xlu0 %v858_v51 }
 0x1dd   :  { %v2162_v59 = vadd.f32 %v1978_v46, %v746_v56  ;;  %v867_v4 = vsel %vm755_vm1, %v2159_v57, -inf }
 0x1de   :  { %862 = vmax.xlane.f32.xlu1 %v861_v62 }
 0x1df   :  { %v864_v1 = vsel %vm755_vm1, %v2162_v59, -inf }
 0x1e0   :  { %865 = vmax.xlane.f32.xlu0 %v864_v1 }
 0x1e2   :  { %868 = vmax.xlane.f32.xlu1 %v867_v4 }
 0x21f   :  { %v761_v5 = vpop.xlane.xlu0 %760 }
 0x220   :  { %v871_v6 = vsub.f32 %v1981_v48, %v761_v5 }
 0x222   :  { %v910_v11 = vmul.f32 1.442695, %v871_v6 }
 0x223   :  { %v767_v12 = vpop.xlane.xlu1 %766  ;;  %v758_v13 = vpop.xlane.xlu0 %757 }
 0x224   :  { %1538 = vpow2.f32 %v910_v11  ;;  %v873_v46 = vsub.f32 %v1989_v52, %v767_v12  ;;  %v870_v16 = vsub.f32 %v1984_v50, %v758_v13 }
 0x226   :  { %v914_v19 = vmul.f32 1.442695, %v873_v46  ;;  %v908_v22 = vmul.f32 1.442695, %v870_v16 }
 0x227   :  { %v764_v23 = vpop.xlane.xlu1 %763 }
 0x228   :  { %1540 = vpow2.f32 %v914_v19  ;;  %v872_v24 = vsub.f32 %v1992_v54, %v764_v23 }
 0x229   :  { %1542 = vpow2.f32 %v908_v22  ;;  %v770_v29 = vpop.xlane.xlu0 %769 }
 0x22a   :  { %v912_v30 = vmul.f32 1.442695, %v872_v24  ;;  %v874_v31 = vsub.f32 %v2002_v61, %v770_v29 }
 0x22b   :  { %v773_v48 = vpop.xlane.xlu1 %772 }
 0x22c   :  { %1544 = vpow2.f32 %v912_v30  ;;  %v916_v34 = vmul.f32 1.442695, %v874_v31  ;;  %v875_v37 = vsub.f32 %v1999_v60, %v773_v48 }
 0x22d   :  { %v776_v40 = vpop.xlane.xlu0 %775 }
 0x22e   :  { %v918_v52 = vmul.f32 1.442695, %v875_v37  ;;  %v876_v50 = vsub.f32 %v2012_v3, %v776_v40  ;;  %1546 = vpow2.f32 %v916_v34 }
 0x22f   :  { %v779_v41 = vpop.xlane.xlu1 %778 }
 0x230   :  { %1548 = vpow2.f32 %v918_v52  ;;  %v920_v42 = vmul.f32 1.442695, %v876_v50  ;;  %v877_v54 = vsub.f32 %v2009_v2, %v779_v41 }
 0x231   :  { %v2178_v49 = vpop.eup %1538  ;;  %v782_v58 = vpop.xlane.xlu0 %781 }
 0x232   :  { %v922_v51 = vmul.f32 1.442695, %v877_v54  ;;  %v878_v61 = vsub.f32 %v2022_v9, %v782_v58  ;;  %v987_v56 = vsel %vm755_vm1, %v2178_v49, 0.0  ;;  %1550 = vpow2.f32 %v920_v42 }
 0x233   :  { %988 = vadd.xlane.f32.xlu1 %v987_v56  ;;  %v785_v60 = vpop.xlane.xlu1 %784 }
 0x234   :  { %1552 = vpow2.f32 %v922_v51  ;;  %v924_v3 = vmul.f32 1.442695, %v878_v61  ;;  %v879_v62 = vsub.f32 %v2019_v8, %v785_v60 }
 0x235   :  { %v2184_v1 = vpop.eup %1540  ;;  %v788_v4 = vpop.xlane.xlu0 %787 }
 0x236   :  { %v2186_v2 = vpop.eup %1542  ;;  %v926_v5 = vmul.f32 1.442695, %v879_v62  ;;  %v880_v6 = vsub.f32 %v2032_v15, %v788_v4  ;;  %v993_v9 = vsel %vm755_vm1, %v2184_v1, 0.0  ;;  %1554 = vpow2.f32 %v924_v3 }
 0x237   :  { %994 = vadd.xlane.f32.xlu1 %v993_v9  ;;  %v791_v11 = vpop.xlane.xlu1 %790  ;;  %v984_v12 = vsel %vm755_vm1, %v2186_v2, 0.0 }
 0x238   :  { %1556 = vpow2.f32 %v926_v5  ;;  %v928_v13 = vmul.f32 1.442695, %v880_v6  ;;  %v881_v8 = vsub.f32 %v2029_v14, %v791_v11  ;;  %985 = vadd.xlane.f32.xlu0 %v984_v12 }
 0x239   :  { %v2194_v46 = vpop.eup %1544  ;;  %v794_v16 = vpop.xlane.xlu0 %793 }
 0x23a   :  { %v930_v19 = vmul.f32 1.442695, %v881_v8  ;;  %v882_v15 = vsub.f32 %v2042_v21, %v794_v16  ;;  %v990_v22 = vsel %vm755_vm1, %v2194_v46, 0.0  ;;  %1558 = vpow2.f32 %v928_v13 }
 0x23b   :  { %v797_v23 = vpop.xlane.xlu1 %796  ;;  %v2199_v24 = vpop.eup %1546 }
 0x23c   :  { %1560 = vpow2.f32 %v930_v19  ;;  %v932_v29 = vmul.f32 1.442695, %v882_v15  ;;  %v883_v30 = vsub.f32 %v2039_v20, %v797_v23  ;;  %991 = vadd.xlane.f32.xlu0 %v990_v22  ;;  %v996_v40 = vsel %vm755_vm1, %v2199_v24, 0.0 }
 0x23d   :  { %v2202_v14 = vpop.eup %1548  ;;  %v800_v31 = vpop.xlane.xlu0 %799 }
 0x23e   :  { %v934_v48 = vmul.f32 1.442695, %v883_v30  ;;  %v884_v34 = vsub.f32 %v2052_v27, %v800_v31  ;;  %v999_v21 = vsel %vm755_vm1, %v2202_v14, 0.0  ;;  %1562 = vpow2.f32 %v932_v29 }
 0x23f   :  { %1000 = vadd.xlane.f32.xlu1 %v999_v21  ;;  %v803_v37 = vpop.xlane.xlu1 %802  ;;  %v2209_v52 = vpop.eup %1550 }
 0x240   :  { %1564 = vpow2.f32 %v934_v48  ;;  %v936_v20 = vmul.f32 1.442695, %v884_v34  ;;  %v885_v50 = vsub.f32 %v2049_v26, %v803_v37  ;;  %997 = vadd.xlane.f32.xlu0 %v996_v40  ;;  %v1002_v61 = vsel %vm755_vm1, %v2209_v52, 0.0 }
 0x241   :  { %v2212_v41 = vpop.eup %1552  ;;  %v806_v42 = vpop.xlane.xlu0 %805 }
 0x242   :  { %v938_v27 = vmul.f32 1.442695, %v885_v50  ;;  %v886_v54 = vsub.f32 %v2062_v33, %v806_v42  ;;  %v1005_v58 = vsel %vm755_vm1, %v2212_v41, 0.0  ;;  %1566 = vpow2.f32 %v936_v20 }
 0x243   :  { %1006 = vadd.xlane.f32.xlu1 %v1005_v58  ;;  %v809_v51 = vpop.xlane.xlu1 %808  ;;  %v2219_v56 = vpop.eup %1554 }
 0x244   :  { %1568 = vpow2.f32 %v938_v27  ;;  %v940_v26 = vmul.f32 1.442695, %v886_v54  ;;  %v887_v60 = vsub.f32 %v2059_v32, %v809_v51  ;;  %1003 = vadd.xlane.f32.xlu0 %v1002_v61  ;;  %v1008_v9 = vsel %vm755_vm1, %v2219_v56, 0.0 }
 0x245   :  { %v2222_v3 = vpop.eup %1556  ;;  %v812_v62 = vpop.xlane.xlu0 %811 }
 0x246   :  { %v942_v33 = vmul.f32 1.442695, %v887_v60  ;;  %v888_v4 = vsub.f32 %v2072_v39, %v812_v62  ;;  %v1011_v5 = vsel %vm755_vm1, %v2222_v3, 0.0  ;;  %1570 = vpow2.f32 %v940_v26 }
 0x247   :  { %1012 = vadd.xlane.f32.xlu1 %v1011_v5  ;;  %v815_v6 = vpop.xlane.xlu1 %814  ;;  %v2229_v11 = vpop.eup %1558 }
 0x248   :  { %1572 = vpow2.f32 %v942_v33  ;;  %v944_v32 = vmul.f32 1.442695, %v888_v4  ;;  %v889_v12 = vsub.f32 %v2069_v38, %v815_v6  ;;  %1009 = vadd.xlane.f32.xlu0 %v1008_v9  ;;  %v1014_v22 = vsel %vm755_vm1, %v2229_v11, 0.0 }
 0x249   :  { %v2232_v13 = vpop.eup %1560  ;;  %v818_v8 = vpop.xlane.xlu0 %817 }
 0x24a   :  { %v946_v39 = vmul.f32 1.442695, %v889_v12  ;;  %v890_v16 = vsub.f32 %v2082_v45, %v818_v8  ;;  %v1017_v19 = vsel %vm755_vm1, %v2232_v13, 0.0  ;;  %1574 = vpow2.f32 %v944_v32 }
 0x24b   :  { %1018 = vadd.xlane.f32.xlu1 %v1017_v19  ;;  %v821_v15 = vpop.xlane.xlu1 %820  ;;  %v2239_v23 = vpop.eup %1562 }
 0x24c   :  { %1576 = vpow2.f32 %v946_v39  ;;  %v948_v38 = vmul.f32 1.442695, %v890_v16  ;;  %v891_v29 = vsub.f32 %v2079_v44, %v821_v15  ;;  %1015 = vadd.xlane.f32.xlu0 %v1014_v22  ;;  %v1020_v37 = vsel %vm755_vm1, %v2239_v23, 0.0 }
 0x24d   :  { %v2242_v30 = vpop.eup %1564  ;;  %v824_v31 = vpop.xlane.xlu0 %823 }
 0x24e   :  { %v950_v45 = vmul.f32 1.442695, %v891_v29  ;;  %v892_v48 = vsub.f32 %v2092_v55, %v824_v31  ;;  %v1023_v34 = vsel %vm755_vm1, %v2242_v30, 0.0  ;;  %1578 = vpow2.f32 %v948_v38 }
 0x24f   :  { %1024 = vadd.xlane.f32.xlu1 %v1023_v34  ;;  %v827_v21 = vpop.xlane.xlu1 %826  ;;  %v2249_v40 = vpop.eup %1566 }
 0x250   :  { %1580 = vpow2.f32 %v950_v45  ;;  %v952_v44 = vmul.f32 1.442695, %v892_v48  ;;  %v893_v20 = vsub.f32 %v2089_v53, %v827_v21  ;;  %1021 = vadd.xlane.f32.xlu0 %v1020_v37  ;;  %v1026_v51 = vsel %vm755_vm1, %v2249_v40, 0.0 }
 0x251   :  { %v2252_v50 = vpop.eup %1568  ;;  %v830_v42 = vpop.xlane.xlu0 %829 }
 0x252   :  { %v954_v55 = vmul.f32 1.442695, %v893_v20  ;;  %v894_v27 = vsub.f32 %v2102_v0, %v830_v42  ;;  %v1029_v54 = vsel %vm755_vm1, %v2252_v50, 0.0  ;;  %1582 = vpow2.f32 %v952_v44 }
 0x253   :  { %1030 = vadd.xlane.f32.xlu1 %v1029_v54  ;;  %v833_v58 = vpop.xlane.xlu1 %832  ;;  %v2259_v61 = vpop.eup %1570 }
 0x254   :  { %1584 = vpow2.f32 %v954_v55  ;;  %v956_v53 = vmul.f32 1.442695, %v894_v27  ;;  %v895_v26 = vsub.f32 %v2099_v63, %v833_v58  ;;  %1027 = vadd.xlane.f32.xlu0 %v1026_v51  ;;  %v1032_v6 = vsel %vm755_vm1, %v2259_v61, 0.0 }
 0x255   :  { %v2262_v60 = vpop.eup %1572  ;;  %v836_v62 = vpop.xlane.xlu0 %835 }
 0x256   :  { %v958_v0 = vmul.f32 1.442695, %v895_v26  ;;  %v896_v33 = vsub.f32 %v2112_v10, %v836_v62  ;;  %v1035_v4 = vsel %vm755_vm1, %v2262_v60, 0.0  ;;  %1586 = vpow2.f32 %v956_v53 }
 0x257   :  { %1036 = vadd.xlane.f32.xlu1 %v1035_v4  ;;  %v839_v5 = vpop.xlane.xlu1 %838  ;;  %v2269_v9 = vpop.eup %1574 }
 0x258   :  { %1588 = vpow2.f32 %v958_v0  ;;  %v960_v63 = vmul.f32 1.442695, %v896_v33  ;;  %v897_v32 = vsub.f32 %v2109_v7, %v839_v5  ;;  %1033 = vadd.xlane.f32.xlu0 %v1032_v6  ;;  %v1038_v15 = vsel %vm755_vm1, %v2269_v9, 0.0 }
 0x259   :  { %v2272_v12 = vpop.eup %1576  ;;  %v842_v8 = vpop.xlane.xlu0 %841 }
 0x25a   :  { %v962_v10 = vmul.f32 1.442695, %v897_v32  ;;  %v898_v39 = vsub.f32 %v2122_v18, %v842_v8  ;;  %v1041_v16 = vsel %vm755_vm1, %v2272_v12, 0.0  ;;  %1590 = vpow2.f32 %v960_v63 }
 0x25b   :  { %1042 = vadd.xlane.f32.xlu1 %v1041_v16  ;;  %v845_v19 = vpop.xlane.xlu1 %844  ;;  %v2279_v22 = vpop.eup %1578 }
 0x25c   :  { %1592 = vpow2.f32 %v962_v10  ;;  %v964_v7 = vmul.f32 1.442695, %v898_v39  ;;  %v899_v38 = vsub.f32 %v2119_v17, %v845_v19  ;;  %1039 = vadd.xlane.f32.xlu0 %v1038_v15  ;;  %v1044_v21 = vsel %vm755_vm1, %v2279_v22, 0.0 }
 0x25d   :  { %v2282_v29 = vpop.eup %1580  ;;  %v848_v31 = vpop.xlane.xlu0 %847 }
 0x25e   :  { %v966_v18 = vmul.f32 1.442695, %v899_v38  ;;  %v900_v45 = vsub.f32 %v2132_v28, %v848_v31  ;;  %v1047_v48 = vsel %vm755_vm1, %v2282_v29, 0.0  ;;  %1594 = vpow2.f32 %v964_v7 }
 0x25f   :  { %1048 = vadd.xlane.f32.xlu1 %v1047_v48  ;;  %v851_v34 = vpop.xlane.xlu1 %850  ;;  %v2289_v37 = vpop.eup %1582 }
 0x260   :  { %1596 = vpow2.f32 %v966_v18  ;;  %v968_v17 = vmul.f32 1.442695, %v900_v45  ;;  %v901_v44 = vsub.f32 %v2129_v25, %v851_v34  ;;  %1045 = vadd.xlane.f32.xlu0 %v1044_v21  ;;  %v1050_v58 = vsel %vm755_vm1, %v2289_v37, 0.0 }
 0x261   :  { %v2292_v20 = vpop.eup %1584  ;;  %v854_v42 = vpop.xlane.xlu0 %853 }
 0x262   :  { %v970_v28 = vmul.f32 1.442695, %v901_v44  ;;  %v902_v55 = vsub.f32 %v2142_v36, %v854_v42  ;;  %v1053_v27 = vsel %vm755_vm1, %v2292_v20, 0.0  ;;  %1598 = vpow2.f32 %v968_v17 }
 0x263   :  { %1054 = vadd.xlane.f32.xlu1 %v1053_v27  ;;  %v857_v54 = vpop.xlane.xlu1 %856  ;;  %v2299_v51 = vpop.eup %1586 }
 0x264   :  { %1600 = vpow2.f32 %v970_v28  ;;  %v972_v25 = vmul.f32 1.442695, %v902_v55  ;;  %v903_v53 = vsub.f32 %v2139_v35, %v857_v54  ;;  %1051 = vadd.xlane.f32.xlu0 %v1050_v58  ;;  %v1056_v5 = vsel %vm755_vm1, %v2299_v51, 0.0 }
 0x265   :  { %v2302_v26 = vpop.eup %1588  ;;  %v860_v62 = vpop.xlane.xlu0 %859 }
 0x266   :  { %v974_v36 = vmul.f32 1.442695, %v903_v53  ;;  %v904_v0 = vsub.f32 %v2152_v47, %v860_v62  ;;  %v1059_v33 = vsel %vm755_vm1, %v2302_v26, 0.0  ;;  %1602 = vpow2.f32 %v972_v25 }
 0x267   :  { %1060 = vadd.xlane.f32.xlu1 %v1059_v33  ;;  %v863_v4 = vpop.xlane.xlu1 %862  ;;  %v2309_v6 = vpop.eup %1590 }
 0x268   :  { %1604 = vpow2.f32 %v974_v36  ;;  %v976_v35 = vmul.f32 1.442695, %v904_v0  ;;  %v905_v63 = vsub.f32 %v2149_v43, %v863_v4  ;;  %1057 = vadd.xlane.f32.xlu0 %v1056_v5  ;;  %v1062_v19 = vsel %vm755_vm1, %v2309_v6, 0.0 }
 0x269   :  { %v2312_v32 = vpop.eup %1592  ;;  %v866_v8 = vpop.xlane.xlu0 %865 }
 0x26a   :  { %v978_v47 = vmul.f32 1.442695, %v905_v63  ;;  %v906_v10 = vsub.f32 %v2162_v59, %v866_v8  ;;  %v1065_v39 = vsel %vm755_vm1, %v2312_v32, 0.0  ;;  %1606 = vpow2.f32 %v976_v35 }
 0x26b   :  { %1066 = vadd.xlane.f32.xlu1 %v1065_v39  ;;  %v869_v16 = vpop.xlane.xlu1 %868  ;;  %v2319_v15 = vpop.eup %1594 }
 0x26c   :  { %1608 = vpow2.f32 %v978_v47  ;;  %v980_v43 = vmul.f32 1.442695, %v906_v10  ;;  %v907_v7 = vsub.f32 %v2159_v57, %v869_v16  ;;  %1063 = vadd.xlane.f32.xlu0 %v1062_v19  ;;  %v1068_v18 = vsel %vm755_vm1, %v2319_v15, 0.0 }
 0x26d   :  { %v2322_v38 = vpop.eup %1596 }
 0x26e   :  { %v982_v31 = vmul.f32 1.442695, %v907_v7  ;;  %v1071_v59 = vsel %vm755_vm1, %v2322_v38, 0.0  ;;  %1610 = vpow2.f32 %v980_v43 }
 0x26f   :  { %1072 = vadd.xlane.f32.xlu1 %v1071_v59  ;;  %v2328_v45 = vpop.eup %1598 }
 0x270   :  { %1612 = vpow2.f32 %v982_v31  ;;  %1069 = vadd.xlane.f32.xlu0 %v1068_v18  ;;  %v1074_v34 = vsel %vm755_vm1, %v2328_v45, 0.0 }
 0x271   :  { %v2330_v48 = vpop.eup %1600 }
 0x272   :  { %v1077_v57 = vsel %vm755_vm1, %v2330_v48, 0.0 }
 0x273   :  { %1078 = vadd.xlane.f32.xlu1 %v1077_v57  ;;  %v2336_v21 = vpop.eup %1602 }
 0x274   :  { %1075 = vadd.xlane.f32.xlu0 %v1074_v34  ;;  %v1080_v42 = vsel %vm755_vm1, %v2336_v21, 0.0 }
 0x275   :  { %v2338_v17 = vpop.eup %1604 }
 0x276   :  { %v1083_v44 = vsel %vm755_vm1, %v2338_v17, 0.0 }
 0x277   :  { %1084 = vadd.xlane.f32.xlu1 %v1083_v44  ;;  %v2344_v28 = vpop.eup %1606 }
 0x278   :  { %1081 = vadd.xlane.f32.xlu0 %v1080_v42  ;;  %v1086_v54 = vsel %vm755_vm1, %v2344_v28, 0.0 }
 0x279   :  { %v2346_v55 = vpop.eup %1608 }
 0x27a   :  { %v1089_v27 = vsel %vm755_vm1, %v2346_v55, 0.0 }
 0x27b   :  { %1090 = vadd.xlane.f32.xlu1 %v1089_v27  ;;  %v2352_v58 = vpop.eup %1610 }
 0x27c   :  { %1087 = vadd.xlane.f32.xlu0 %v1086_v54  ;;  %v1092_v62 = vsel %vm755_vm1, %v2352_v58, 0.0 }
 0x27d   :  { %v2354_v25 = vpop.eup %1612 }
 0x27e   :  { %v1095_v53 = vsel %vm755_vm1, %v2354_v25, 0.0 }
 0x27f   :  { %1096 = vadd.xlane.f32.xlu1 %v1095_v53 }
 0x280   :  { %1093 = vadd.xlane.f32.xlu0 %v1092_v62 }
 0x2bc   :  { %v989_v36 = vpop.xlane.xlu1 %988 }
 0x2bd   :  { %1614 = vrcp.f32 %v989_v36 }
 0x2c0   :  { %v995_v0 = vpop.xlane.xlu1 %994 }
 0x2c1   :  { %1616 = vrcp.f32 %v995_v0  ;;  %v986_v33 = vpop.xlane.xlu0 %985 }
 0x2c2   :  { %1618 = vrcp.f32 %v986_v33 }
 0x2c5   :  { %v992_v4 = vpop.xlane.xlu0 %991 }
 0x2c6   :  { %1620 = vrcp.f32 %v992_v4 }
 0x2c8   :  { %v1001_v5 = vpop.xlane.xlu1 %1000 }
 0x2c9   :  { %1622 = vrcp.f32 %v1001_v5  ;;  %v998_v35 = vpop.xlane.xlu0 %997 }
 0x2ca   :  { %v1615_v63 = vpop.eup %1614  ;;  %1624 = vrcp.f32 %v998_v35 }
 0x2cb   :  { %v1101_v8 = vmul.f32 %v1615_v63, %v2178_v49 }
 0x2cc   :  { %v1007_v47 = vpop.xlane.xlu1 %1006 }
 0x2cd   :  { %1175 = vst.msk [vmem:[%s2555_s5 + $0x8] sm:$0xff] %vm755_vm1, %v1101_v8  ;;  %1626 = vrcp.f32 %v1007_v47  ;;  %v1004_v10 = vpop.xlane.xlu0 %1003 }
 0x2ce   :  { %v1617_v39 = vpop.eup %1616  ;;  %1628 = vrcp.f32 %v1004_v10 }
 0x2cf   :  { %v1619_v16 = vpop.eup %1618  ;;  %v1105_v19 = vmul.f32 %v1617_v39, %v2184_v1 }
 0x2d0   :  { %v1099_v43 = vmul.f32 %v1619_v16, %v2186_v2  ;;  %v1013_v7 = vpop.xlane.xlu1 %1012 }
 0x2d1   :  { %1177 = vst.msk [vmem:[%s2555_s5 + $0x18] sm:$0xff] %vm755_vm1, %v1105_v19  ;;  %1630 = vrcp.f32 %v1013_v7  ;;  %v1010_v49 = vpop.xlane.xlu0 %1009 }
 0x2d2   :  { %1174 = vst.msk [vmem:[%s2555_s5] sm:$0xff] %vm755_vm1, %v1099_v43  ;;  %1632 = vrcp.f32 %v1010_v49 }
 0x2d3   :  { %v1621_v31 = vpop.eup %1620 }
 0x2d4   :  { %v1103_v59 = vmul.f32 %v1621_v31, %v2194_v46  ;;  %v1019_v1 = vpop.xlane.xlu1 %1018 }
 0x2d5   :  { %1634 = vrcp.f32 %v1019_v1  ;;  %v1016_v2 = vpop.xlane.xlu0 %1015 }
 0x2d6   :  { %v1623_v18 = vpop.eup %1622  ;;  %1176 = vst.msk [vmem:[%s2555_s5 + $0x10] sm:$0xff] %vm755_vm1, %v1103_v59  ;;  %1636 = vrcp.f32 %v1016_v2 }
 0x2d7   :  { %v1625_v57 = vpop.eup %1624  ;;  %v1109_v34 = vmul.f32 %v1623_v18, %v2202_v14 }
 0x2d8   :  { %v1107_v44 = vmul.f32 %v1625_v57, %v2199_v24  ;;  %v1025_v42 = vpop.xlane.xlu1 %1024 }
 0x2d9   :  { %1179 = vst.msk [vmem:[%s2555_s5 + $0x28] sm:$0xff] %vm755_vm1, %v1109_v34  ;;  %1638 = vrcp.f32 %v1025_v42  ;;  %v1022_v46 = vpop.xlane.xlu0 %1021 }
 0x2da   :  { %v1627_v27 = vpop.eup %1626  ;;  %1178 = vst.msk [vmem:[%s2555_s5 + $0x20] sm:$0xff] %vm755_vm1, %v1107_v44  ;;  %1640 = vrcp.f32 %v1022_v46 }
 0x2db   :  { %v1629_v54 = vpop.eup %1628  ;;  %v1113_v14 = vmul.f32 %v1627_v27, %v2212_v41 }
 0x2dc   :  { %v1111_v24 = vmul.f32 %v1629_v54, %v2209_v52  ;;  %v1031_v53 = vpop.xlane.xlu1 %1030 }
 0x2dd   :  { %1181 = vst.msk [vmem:[%s2555_s5 + $0x38] sm:$0xff] %vm755_vm1, %v1113_v14  ;;  %1642 = vrcp.f32 %v1031_v53  ;;  %v1028_v62 = vpop.xlane.xlu0 %1027 }
 0x2de   :  { %v1631_v36 = vpop.eup %1630  ;;  %1180 = vst.msk [vmem:[%s2555_s5 + $0x30] sm:$0xff] %vm755_vm1, %v1111_v24  ;;  %1644 = vrcp.f32 %v1028_v62 }
 0x2df   :  { %v1633_v0 = vpop.eup %1632  ;;  %v1117_v41 = vmul.f32 %v1631_v36, %v2222_v3 }
 0x2e0   :  { %v1115_v52 = vmul.f32 %v1633_v0, %v2219_v56  ;;  %v1037_v33 = vpop.xlane.xlu1 %1036 }
 0x2e1   :  { %1183 = vst.msk [vmem:[%s2555_s5 + $0x48] sm:$0xff] %vm755_vm1, %v1117_v41  ;;  %1646 = vrcp.f32 %v1037_v33  ;;  %v1034_v4 = vpop.xlane.xlu0 %1033 }
 0x2e2   :  { %v1635_v5 = vpop.eup %1634  ;;  %1182 = vst.msk [vmem:[%s2555_s5 + $0x40] sm:$0xff] %vm755_vm1, %v1115_v52  ;;  %1648 = vrcp.f32 %v1034_v4 }
 0x2e3   :  { %v1637_v35 = vpop.eup %1636  ;;  %v1121_v3 = vmul.f32 %v1635_v5, %v2232_v13 }
 0x2e4   :  { %v1119_v56 = vmul.f32 %v1637_v35, %v2229_v11  ;;  %v1043_v63 = vpop.xlane.xlu1 %1042 }
 0x2e5   :  { %1185 = vst.msk [vmem:[%s2555_s5 + $0x58] sm:$0xff] %vm755_vm1, %v1121_v3  ;;  %1650 = vrcp.f32 %v1043_v63  ;;  %v1040_v8 = vpop.xlane.xlu0 %1039 }
 0x2e6   :  { %v1639_v47 = vpop.eup %1638  ;;  %1184 = vst.msk [vmem:[%s2555_s5 + $0x50] sm:$0xff] %vm755_vm1, %v1119_v56  ;;  %1652 = vrcp.f32 %v1040_v8 }
 0x2e7   :  { %v1641_v10 = vpop.eup %1640  ;;  %v1125_v13 = vmul.f32 %v1639_v47, %v2242_v30 }
 0x2e8   :  { %v1123_v11 = vmul.f32 %v1641_v10, %v2239_v23  ;;  %v1049_v39 = vpop.xlane.xlu1 %1048 }
 0x2e9   :  { %1187 = vst.msk [vmem:[%s2555_s5 + $0x68] sm:$0xff] %vm755_vm1, %v1125_v13  ;;  %1654 = vrcp.f32 %v1049_v39  ;;  %v1046_v16 = vpop.xlane.xlu0 %1045 }
 0x2ea   :  { %v1643_v19 = vpop.eup %1642  ;;  %1186 = vst.msk [vmem:[%s2555_s5 + $0x60] sm:$0xff] %vm755_vm1, %v1123_v11  ;;  %1656 = vrcp.f32 %v1046_v16 }
 0x2eb   :  { %v1645_v43 = vpop.eup %1644  ;;  %v1129_v30 = vmul.f32 %v1643_v19, %v2252_v50 }
 0x2ec   :  { %v1127_v23 = vmul.f32 %v1645_v43, %v2249_v40  ;;  %v1055_v7 = vpop.xlane.xlu1 %1054 }
 0x2ed   :  { %1189 = vst.msk [vmem:[%s2555_s5 + $0x78] sm:$0xff] %vm755_vm1, %v1129_v30  ;;  %1658 = vrcp.f32 %v1055_v7  ;;  %v1052_v49 = vpop.xlane.xlu0 %1051 }
 0x2ee   :  { %v1647_v31 = vpop.eup %1646  ;;  %1188 = vst.msk [vmem:[%s2555_s5 + $0x70] sm:$0xff] %vm755_vm1, %v1127_v23  ;;  %1660 = vrcp.f32 %v1052_v49 }
 0x2ef   :  { %v1649_v59 = vpop.eup %1648  ;;  %v1133_v50 = vmul.f32 %v1647_v31, %v2262_v60 }
 0x2f0   :  { %v1131_v40 = vmul.f32 %v1649_v59, %v2259_v61  ;;  %v1061_v1 = vpop.xlane.xlu1 %1060 }
 0x2f1   :  { %1191 = vst.msk [vmem:[%s2555_s5 + $0x88] sm:$0xff] %vm755_vm1, %v1133_v50  ;;  %1662 = vrcp.f32 %v1061_v1  ;;  %v1058_v2 = vpop.xlane.xlu0 %1057 }
 0x2f2   :  { %v1651_v18 = vpop.eup %1650  ;;  %1190 = vst.msk [vmem:[%s2555_s5 + $0x80] sm:$0xff] %vm755_vm1, %v1131_v40  ;;  %1664 = vrcp.f32 %v1058_v2 }
 0x2f3   :  { %v1653_v57 = vpop.eup %1652  ;;  %v1137_v60 = vmul.f32 %v1651_v18, %v2272_v12 }
 0x2f4   :  { %v1135_v61 = vmul.f32 %v1653_v57, %v2269_v9  ;;  %v1067_v34 = vpop.xlane.xlu1 %1066 }
 0x2f5   :  { %1193 = vst.msk [vmem:[%s2555_s5 + $0x98] sm:$0xff] %vm755_vm1, %v1137_v60  ;;  %1666 = vrcp.f32 %v1067_v34  ;;  %v1064_v44 = vpop.xlane.xlu0 %1063 }
 0x2f6   :  { %v1655_v42 = vpop.eup %1654  ;;  %1192 = vst.msk [vmem:[%s2555_s5 + $0x90] sm:$0xff] %vm755_vm1, %v1135_v61  ;;  %1668 = vrcp.f32 %v1064_v44 }
 0x2f7   :  { %v1657_v46 = vpop.eup %1656  ;;  %v1141_v12 = vmul.f32 %v1655_v42, %v2282_v29 }
 0x2f8   :  { %v1139_v9 = vmul.f32 %v1657_v46, %v2279_v22  ;;  %v1073_v27 = vpop.xlane.xlu1 %1072 }
 0x2f9   :  { %1195 = vst.msk [vmem:[%s2555_s5 + $0xa8] sm:$0xff] %vm755_vm1, %v1141_v12  ;;  %1670 = vrcp.f32 %v1073_v27  ;;  %v1070_v54 = vpop.xlane.xlu0 %1069 }
 0x2fa   :  { %v1659_v14 = vpop.eup %1658  ;;  %1194 = vst.msk [vmem:[%s2555_s5 + $0xa0] sm:$0xff] %vm755_vm1, %v1139_v9  ;;  %1672 = vrcp.f32 %v1070_v54 }
 0x2fb   :  { %v1661_v24 = vpop.eup %1660  ;;  %v1145_v29 = vmul.f32 %v1659_v14, %v2292_v20 }
 0x2fc   :  { %v1143_v22 = vmul.f32 %v1661_v24, %v2289_v37  ;;  %v1079_v53 = vpop.xlane.xlu1 %1078 }
 0x2fd   :  { %1197 = vst.msk [vmem:[%s2555_s5 + $0xb8] sm:$0xff] %vm755_vm1, %v1145_v29  ;;  %1674 = vrcp.f32 %v1079_v53  ;;  %v1076_v62 = vpop.xlane.xlu0 %1075 }
 0x2fe   :  { %v1663_v36 = vpop.eup %1662  ;;  %1196 = vst.msk [vmem:[%s2555_s5 + $0xb0] sm:$0xff] %vm755_vm1, %v1143_v22  ;;  %1676 = vrcp.f32 %v1076_v62 }
 0x2ff   :  { %v1665_v0 = vpop.eup %1664  ;;  %v1149_v20 = vmul.f32 %v1663_v36, %v2302_v26 }
 0x300   :  { %v1147_v37 = vmul.f32 %v1665_v0, %v2299_v51  ;;  %v1085_v41 = vpop.xlane.xlu1 %1084 }
 0x301   :  { %1199 = vst.msk [vmem:[%s2555_s5 + $0xc8] sm:$0xff] %vm755_vm1, %v1149_v20  ;;  %1678 = vrcp.f32 %v1085_v41  ;;  %v1082_v52 = vpop.xlane.xlu0 %1081 }
 0x302   :  { %v1667_v33 = vpop.eup %1666  ;;  %1198 = vst.msk [vmem:[%s2555_s5 + $0xc0] sm:$0xff] %vm755_vm1, %v1147_v37  ;;  %1680 = vrcp.f32 %v1082_v52 }
 0x303   :  { %v1669_v4 = vpop.eup %1668  ;;  %v1153_v26 = vmul.f32 %v1667_v33, %v2312_v32 }
 0x304   :  { %v1151_v51 = vmul.f32 %v1669_v4, %v2309_v6  ;;  %v1091_v5 = vpop.xlane.xlu1 %1090 }
 0x305   :  { %1201 = vst.msk [vmem:[%s2555_s5 + $0xd8] sm:$0xff] %vm755_vm1, %v1153_v26  ;;  %1682 = vrcp.f32 %v1091_v5  ;;  %v1088_v35 = vpop.xlane.xlu0 %1087 }
 0x306   :  { %v1671_v3 = vpop.eup %1670  ;;  %1200 = vst.msk [vmem:[%s2555_s5 + $0xd0] sm:$0xff] %vm755_vm1, %v1151_v51  ;;  %1684 = vrcp.f32 %v1088_v35 }
 0x307   :  { %v1673_v56 = vpop.eup %1672  ;;  %v1157_v32 = vmul.f32 %v1671_v3, %v2322_v38 }
 0x308   :  { %v1155_v6 = vmul.f32 %v1673_v56, %v2319_v15  ;;  %v1097_v63 = vpop.xlane.xlu1 %1096 }
 0x309   :  { %1203 = vst.msk [vmem:[%s2555_s5 + $0xe8] sm:$0xff] %vm755_vm1, %v1157_v32  ;;  %1686 = vrcp.f32 %v1097_v63  ;;  %v1094_v8 = vpop.xlane.xlu0 %1093 }
 0x30a   :  { %v1675_v47 = vpop.eup %1674  ;;  %1202 = vst.msk [vmem:[%s2555_s5 + $0xe0] sm:$0xff] %vm755_vm1, %v1155_v6  ;;  %1688 = vrcp.f32 %v1094_v8 }
 0x30b   :  { %v1677_v10 = vpop.eup %1676  ;;  %v1161_v38 = vmul.f32 %v1675_v47, %v2330_v48 }
 0x30c   :  { %v1159_v15 = vmul.f32 %v1677_v10, %v2328_v45 }
 0x30d   :  { %1205 = vst.msk [vmem:[%s2555_s5 + $0xf8] sm:$0xff] %vm755_vm1, %v1161_v38 }
 0x30e   :  { %v1679_v13 = vpop.eup %1678  ;;  %1204 = vst.msk [vmem:[%s2555_s5 + $0xf0] sm:$0xff] %vm755_vm1, %v1159_v15 }
 0x30f   :  { %v1681_v11 = vpop.eup %1680  ;;  %v1165_v39 = vmul.f32 %v1679_v13, %v2338_v17 }
 0x310   :  { %v1163_v16 = vmul.f32 %v1681_v11, %v2336_v21 }
 0x311   :  { %1207 = vst.msk [vmem:[%s2555_s5 + $0x108] sm:$0xff] %vm755_vm1, %v1165_v39 }
 0x312   :  { %v1683_v45 = vpop.eup %1682  ;;  %1206 = vst.msk [vmem:[%s2555_s5 + $0x100] sm:$0xff] %vm755_vm1, %v1163_v16 }
 0x313   :  { %v1685_v48 = vpop.eup %1684  ;;  %v1169_v19 = vmul.f32 %v1683_v45, %v2346_v55 }
 0x314   :  { %v1167_v43 = vmul.f32 %v1685_v48, %v2344_v28 }
 0x315   :  { %1209 = vst.msk [vmem:[%s2555_s5 + $0x118] sm:$0xff] %vm755_vm1, %v1169_v19 }
 0x316   :  { %v1687_v21 = vpop.eup %1686  ;;  %1208 = vst.msk [vmem:[%s2555_s5 + $0x110] sm:$0xff] %vm755_vm1, %v1167_v43 }
 0x317   :  { %v1689_v17 = vpop.eup %1688  ;;  %v1173_v30 = vmul.f32 %v1687_v21, %v2354_v25 }
 0x318   :  { %v1171_v23 = vmul.f32 %v1689_v17, %v2352_v58 }
 0x319   :  { %1211 = vst.msk [vmem:[%s2555_s5 + $0x128] sm:$0xff] %vm755_vm1, %v1173_v30 }
 0x31a   :  { %1210 = vst.msk [vmem:[%s2555_s5 + $0x120] sm:$0xff] %vm755_vm1, %v1171_v23 }

</bundles_post_ra>
